<compile_context>
chip_gen: v7x
topology: tpu7x:2x2x1
jax: 0.10.0
libtpu: 0.0.40
codegen_flags: <defaults>
</compile_context>

<pallas_src>
import math

import jax
import jax.numpy as jnp
from jax.experimental import pallas as pl
from jax.experimental.pallas import tpu as pltpu


# ----------------------------------------------------------------------------
# Pallas kernel: fused "add positional encoding" over the whole batch
# ----------------------------------------------------------------------------
def _posenc_kernel(x_ref, pe_ref, o_ref):
    # x_ref : (N, S*E)  batch-major, lane-dense activation slab
    # pe_ref: (1, S*E)  positional-encoding slab (broadcast over the batch rows,
    #                   i.e. a cheap sublane broadcast on the VPU)
    o_ref[...] = x_ref[...] + pe_ref[...]


# ----------------------------------------------------------------------------
# Host-side constant buffer (mirrors the registered `pe` buffer in __init__)
# ----------------------------------------------------------------------------
def make_pe(d_model: int, max_len: int = 5000) -> jnp.ndarray:
    """Returns pe of shape (max_len, d_model); PyTorch stores (max_len, 1, d_model)."""
    position = jnp.arange(max_len, dtype=jnp.float32)[:, None]          # (L, 1)
    div_term = jnp.exp(jnp.arange(0, d_model, 2, dtype=jnp.float32)
                       * (-math.log(10000.0) / d_model))                # (E/2,)
    angles = position * div_term                                        # (L, E/2)
    pe = jnp.zeros((max_len, d_model), jnp.float32)
    pe = pe.at[:, 0::2].set(jnp.sin(angles))
    pe = pe.at[:, 1::2].set(jnp.cos(angles))
    return pe


# ----------------------------------------------------------------------------
# Forward wrapper (matches PositionalEncoding.forward, eval semantics)
# ----------------------------------------------------------------------------
def positional_encoding_forward(x: jnp.ndarray, pe: jnp.ndarray) -> jnp.ndarray:
    """x: (S, N, E) float32;  pe: (max_len, E) constant buffer.  Returns (S, N, E)."""
    s, n, e = x.shape

    # Layout plumbing only: present a lane-dense (N, S*E) slab to the kernel.
    x_slab = jnp.transpose(x, (1, 0, 2)).reshape(n, s * e)     # (N, S*E)
    pe_slab = pe[:s].reshape(1, s * e)                         # (1, S*E) — only pe[:S] staged

    vmem = pl.BlockSpec(memory_space=pltpu.MemorySpace.VMEM)
    out_slab = pl.pallas_call(
        _posenc_kernel,
        out_shape=jax.ShapeDtypeStruct((n, s * e), x.dtype),
        in_specs=[vmem, vmem],
        out_specs=vmem,
    )(x_slab, pe_slab)

    # Dropout(p=0.1): identity in eval mode (see TODO at top of file).
    return jnp.transpose(out_slab.reshape(n, s, e), (1, 0, 2))  # back to (S, N, E)


if __name__ == "__main__":
    S, N, E = 8, 2, 32          # seq_len, batch, d_model  (S*E = 256: lane-dense)
    key = jax.random.PRNGKey(0)

    x = jax.random.normal(key, (S, N, E), jnp.float32)
    pe = make_pe(E, max_len=5000)

    fwd = jax.jit(positional_encoding_forward)
    out = jax.block_until_ready(fwd(x, pe))

    # Pure-JAX reference: x + pe[:S] broadcast over batch (dropout = identity).
    ref = x + pe[:S][:, None, :]

    assert out.shape == (S, N, E)
    assert bool(jnp.all(jnp.isfinite(out)))
    assert bool(jnp.allclose(out, ref, atol=1e-6, rtol=1e-6))
    print("KERNEL_OK")
</pallas_src>

<mosaic_0001>
module attributes {stable_mosaic.version = 11 : i64} {
  func.func @_posenc_kernel(%arg0: memref<2x256xf32, #tpu.memory_space<vmem>>, %arg1: memref<1x256xf32, #tpu.memory_space<vmem>>, %arg2: memref<2x256xf32, #tpu.memory_space<vmem>>) attributes {dimension_semantics = [], scalar_prefetch = 0 : i64, scratch_operands = 0 : i64, tpu.core_type = #tpu.core_type<tc>} {
    %c0 = arith.constant 0 : index
    %c0_0 = arith.constant 0 : index
    %0 = vector.load %arg0[%c0, %c0_0] : memref<2x256xf32, #tpu.memory_space<vmem>>, vector<2x256xf32>
    %c0_1 = arith.constant 0 : index
    %c0_2 = arith.constant 0 : index
    %1 = vector.load %arg1[%c0_1, %c0_2] : memref<1x256xf32, #tpu.memory_space<vmem>>, vector<1x256xf32>
    %2 = vector.broadcast %1 : vector<1x256xf32> to vector<2x256xf32>
    %3 = arith.addf %0, %2 : vector<2x256xf32>
    %c0_3 = arith.constant 0 : index
    %c0_4 = arith.constant 0 : index
    %4 = vector.load %arg2[%c0_3, %c0_4] : memref<2x256xf32, #tpu.memory_space<vmem>>, vector<2x256xf32>
    tpu.vector_store %arg2[%c0_3, %c0_4], %3 {strides = array<i32>} : memref<2x256xf32, #tpu.memory_space<vmem>>, vector<2x256xf32>,
    return
  }
}

</mosaic_0001>

<bundles_post_ra>
// kernel: positional_encoding_forward.1
= control target key start
LH: loop header
LB: loop body
LE: loop exit
PB: predicated region body
PF: predicated region fallthrough
CT: control target
= control target key end

     0   :  { %v14_v0 = vlaneseq  ;;  %v38_v1 = vmov 1983009808   ;;  %s63_s1 = inlined_call_operand.vmem [shape: f32[1,256], index: 1, kind: input, shape index: {}]   ;;  %s64_s0 = inlined_call_operand.vmem [shape: f32[2,256], index: 0, kind: input, shape index: {}]   ;;  %s65_s2 = inlined_call_operand.vmem [shape: f32[2,256], index: 2, kind: output, shape index: {}]  }
   0x1   :  { %v24_v2 = vunpack.c.l.s4 %v38_v1  ;;  %v12_v4 = vld [vmem:[%s63_s1] sm:$0x3] }
   0x2   :  { %v15_v3 = vshrl.u32 %v14_v0, 7  ;;  %v11_v12 = vld [vmem:[%s64_s0] sm:$0xf] }
   0x3   :  { %v25_v5 = vunpack.c.0.s8 %v24_v2 }
   0x4   :  { %v16_v6 = vsub.s32 0, %v15_v3  ;;  %v20_v7 = vsub.s32 1, %v15_v3 }
   0x5   :  { %v28_v10 = vsub.s32 %v25_v5, %v15_v3 }
   0x6   :  { %v17_v8 = vrot.slane %v12_v4, %v16_v6  ;;  %v21_v9 = vrot.slane %v12_v4, %v20_v7 }
   0x8   :  { %v22_v11 = vcombine.low %v17_v8, %v21_v9 }
   0xa   :  { %v29_v13 = vrot.slane %v22_v11, %v28_v10 }
   0xc   :  { %v31_v14 = vadd.f32 %v29_v13, %v11_v12 }
   0xe   :  { %32 = vst [vmem:[%s65_s2] sm:$0xf] %v31_v14 }

</bundles_post_ra>
